<compile_context>
chip_gen: v5e
topology: v5e:2x2
jax: 0.10.0
libtpu: 0.0.40
codegen_flags: <defaults>
</compile_context>

<pallas_src>
import functools
import numpy as np
import jax
import jax.numpy as jnp
from jax import lax
from jax.experimental import pallas as pl
from jax.experimental.pallas import tpu as pltpu

LANE = 128
_DN = (((1,), (1,)), ((), ()))  # contract last dims of both operands (x @ W^T)


def _rup(n, m=LANE):
    return ((n + m - 1) // m) * m


# ----------------------------------------------------------------------------
# Mask construction — exact port of MADE.create_masks
# ----------------------------------------------------------------------------
def create_masks(n_in, hidden_dims, seed=0, random_order=False, gaussian=False):
    np.random.seed(seed)
    masks = {}
    L = len(hidden_dims)
    D = n_in
    masks[0] = (np.random.permutation(n_in) if random_order else np.arange(n_in))
    for l in range(L):
        masks[l + 1] = np.random.randint(masks[l].min(), D - 1, size=hidden_dims[l])

    mask_matrix = []
    for k in range(len(masks) - 1):
        m, m_next = masks[k], masks[k + 1]
        M = (m_next[:, None] >= m[None, :]).astype(np.float32)
        mask_matrix.append(M)
    m, m_out = masks[L], masks[0]
    M_out = (m_out[:, None] > m[None, :]).astype(np.float32)
    if gaussian:
        M_out = np.concatenate((M_out, M_out), axis=0)
    mask_matrix.append(M_out)
    return mask_matrix


# ----------------------------------------------------------------------------
# Kernel: masked-MLP forward on one batch tile. Weights are pre-masked,
# pre-padded, bf16. Contraction over the last dim of both operands so the
# PyTorch-convention [n_out, n_in] weight feeds the MXU with no transpose.
# ----------------------------------------------------------------------------
def _make_kernel(apply_sigmoid):
    def kernel(x_ref, w0_ref, b0_ref, w1_ref, b1_ref, w2_ref, b2_ref, o_ref):
        # x streams in unpadded (last dim = n_in); cast to bf16 for the MXU.
        x = x_ref[...].astype(jnp.bfloat16)                          # [TB, n_in]
        h = lax.dot_general(x, w0_ref[...], _DN,
                            preferred_element_type=jnp.float32)       # [TB, Ph0]
        h = jnp.maximum(h + b0_ref[...], 0.0)                         # f32 VPU
        h = lax.dot_general(h.astype(jnp.bfloat16), w1_ref[...], _DN,
                            preferred_element_type=jnp.float32)
        h = jnp.maximum(h + b1_ref[...], 0.0)
        y = lax.dot_general(h.astype(jnp.bfloat16), w2_ref[...], _DN,
                            preferred_element_type=jnp.float32)
        y = y + b2_ref[...]
        if apply_sigmoid:
            # sigmoid = 1/(1+exp(-y)): exp and approx reciprocal both on EUP.
            y = pl.reciprocal(1.0 + jnp.exp(-y), approx=True)
        o_ref[...] = y.astype(o_ref.dtype)
    return kernel


_kernel_sigmoid = _make_kernel(True)
_kernel_linear = _make_kernel(False)   # gaussian=True path (no sigmoid)


# ----------------------------------------------------------------------------
# Parameter prep: bake masks into weights, zero-pad output dims (and all but
# the first input dim) to 128 lanes, cast MXU operands to bf16. Biases f32.
# ----------------------------------------------------------------------------
def prepare_made_params(params, masks):
    prepped = []
    for li, ((W, b), M) in enumerate(zip(params, masks)):
        n_out, n_in = W.shape
        Po = _rup(n_out)
        Pi = n_in if li == 0 else _rup(n_in)   # layer-0 K stays unpadded (matches raw x)
        Wm = jnp.zeros((Po, Pi), jnp.float32).at[:n_out, :n_in].set(M * W)
        bp = jnp.zeros((1, Po), jnp.float32).at[0, :n_out].set(b)
        prepped.append((Wm.astype(jnp.bfloat16), bp))
    return prepped


# ----------------------------------------------------------------------------
# Wrapper: tile the batch over a 1-D "parallel" grid; weights/biases are
# VMEM-resident (constant index_map), only x / out stream.
# ----------------------------------------------------------------------------
def _choose_batch_tile(B, batch_tile):
    # Multiple of 16 (bf16 sublane packing). If the whole batch fits in one
    # tile but is big enough to split, halve it so the grid length is >= 2
    # and the "parallel" axis shards across both TensorCores (v7x megacore).
    TB = min(batch_tile, _rup(B, 16))
    if TB >= 32 and _rup(B, TB) // TB < 2:
        TB = _rup(pl.cdiv(B, 2), 16)
    return TB


@functools.partial(jax.jit, static_argnames=("n_out", "gaussian", "batch_tile"))
def made_forward(x, prepped, *, n_out, gaussian=False, batch_tile=512):
    B, n_in = x.shape
    Po = prepped[-1][0].shape[0]
    (w0, b0), (w1, b1), (w2, b2) = prepped

    TB = _choose_batch_tile(B, batch_tile)
    Bp = _rup(B, TB)
    # Only the batch dim is padded (cheap); the feature dim stays at n_in, so
    # no wrapper-side pass inflating the streamed input to 128 lanes.
    xp = x if Bp == B else jnp.zeros((Bp, n_in), x.dtype).at[:B].set(x)

    # bf16 output halves writeback traffic; keep f32 for the unbounded
    # gaussian (mu / log-var) head where bf16 may be too coarse.
    out_dtype = jnp.float32 if gaussian else jnp.bfloat16

    resident = lambda a: pl.BlockSpec(a.shape, lambda i: (0,) * a.ndim)
    kernel = _kernel_linear if gaussian else _kernel_sigmoid

    flops = 2 * Bp * sum(w.shape[0] * w.shape[1] for w, _ in prepped)
    bytes_accessed = (xp.size * xp.dtype.itemsize
                      + sum(a.size * a.dtype.itemsize for p in prepped for a in p)
                      + Bp * Po * jnp.dtype(out_dtype).itemsize)

    out = pl.pallas_call(
        kernel,
        out_shape=jax.ShapeDtypeStruct((Bp, Po), out_dtype),
        grid=(Bp // TB,),
        in_specs=[pl.BlockSpec((TB, n_in), lambda i: (i, 0)),
                  resident(w0), resident(b0),
                  resident(w1), resident(b1),
                  resident(w2), resident(b2)],
        out_specs=pl.BlockSpec((TB, Po), lambda i: (i, 0)),
        compiler_params=pltpu.CompilerParams(
            dimension_semantics=("parallel",)),
        cost_estimate=pl.CostEstimate(
            flops=flops,
            transcendentals=0 if gaussian else Bp * Po,
            bytes_accessed=bytes_accessed),
    )(xp, w0, b0, w1, b1, w2, b2)

    # Slice inside the same jit so the padded rows/lanes never round-trip HBM
    # as a separate XLA pass beyond the minimal (B, n_out) gather.
    return out[:B, :n_out]


# ----------------------------------------------------------------------------
# Deterministic parameter init (PyTorch nn.Linear style: U(-1/sqrt(fan_in), ..))
# ----------------------------------------------------------------------------
def init_params(key, n_in, hidden_dims, n_out):
    dims = [n_in] + list(hidden_dims) + [n_out]
    params = []
    for i in range(len(dims) - 1):
        fan_in, fan_out = dims[i], dims[i + 1]
        key, kw, kb = jax.random.split(key, 3)
        bound = 1.0 / np.sqrt(fan_in)
        W = jax.random.uniform(kw, (fan_out, fan_in), jnp.float32, -bound, bound)
        b = jax.random.uniform(kb, (fan_out,), jnp.float32, -bound, bound)
        params.append((W, b))
    return params


if __name__ == "__main__":
    n_in = 16
    hidden_dims = [32, 32]
    gaussian = False
    n_out = 2 * n_in if gaussian else n_in
    B = 64

    key = jax.random.PRNGKey(0)
    key, kx = jax.random.split(key)
    x = jax.random.uniform(kx, (B, n_in), jnp.float32)  # MADE inputs in [0,1]

    params = init_params(key, n_in, hidden_dims, n_out)
    mask_np = create_masks(n_in, hidden_dims, seed=0, random_order=False,
                           gaussian=gaussian)
    masks = [jnp.asarray(m, jnp.float32) for m in mask_np]

    prepped = prepare_made_params(params, masks)

    y = made_forward(x, prepped, n_out=n_out, gaussian=gaussian)
    y = jax.block_until_ready(y).astype(jnp.float32)

    # Reference 1: same bf16-MXU arithmetic in plain JAX (tight-ish check;
    # in-kernel approx reciprocal + bf16 output store add ~1e-3 error).
    h = x.astype(jnp.bfloat16)
    for li, (W, b) in enumerate(prepped):
        z = lax.dot_general(h, W, _DN, preferred_element_type=jnp.float32) + b
        if li < len(prepped) - 1:
            h = jnp.maximum(z, 0.0).astype(jnp.bfloat16)
    ref_bf16 = (z if gaussian else jax.nn.sigmoid(z))[:, :n_out]
    assert jnp.allclose(y, ref_bf16, atol=1e-2), "mismatch vs bf16 reference"

    # Reference 2: original f32 semantics (loose check, bf16 cast tolerance).
    h = x
    for (W, b), M in zip(params[:-1], masks[:-1]):
        h = jnp.maximum(h @ (M * W).T + b, 0.0)
    W, b = params[-1]
    z = h @ (masks[-1] * W).T + b
    ref_f32 = z if gaussian else jax.nn.sigmoid(z)
    assert jnp.allclose(y, ref_f32, atol=3e-2), "mismatch vs f32 reference"

    print("KERNEL_OK")
</pallas_src>

<mosaic_0001>
module attributes {stable_mosaic.version = 11 : i64} {
  func.func @kernel(%arg0: i32, %arg1: memref<32x16xf32, #tpu.memory_space<vmem>>, %arg2: memref<128x16xbf16, #tpu.memory_space<vmem>>, %arg3: memref<1x128xf32, #tpu.memory_space<vmem>>, %arg4: memref<128x128xbf16, #tpu.memory_space<vmem>>, %arg5: memref<1x128xf32, #tpu.memory_space<vmem>>, %arg6: memref<128x128xbf16, #tpu.memory_space<vmem>>, %arg7: memref<1x128xf32, #tpu.memory_space<vmem>>, %arg8: memref<32x128xbf16, #tpu.memory_space<vmem>>) attributes {dimension_semantics = [#tpu.dimension_semantics<parallel>], iteration_bounds = array<i64: 2>, scalar_prefetch = 0 : i64, scratch_operands = 0 : i64, tpu.core_type = #tpu.core_type<tc>, window_params = [{transform_indices = @transform_0, window_bounds = array<i64: 32, 16>}, {pipeline_mode = #tpu.pipeline_mode<synchronous>, transform_indices = @transform_1, window_bounds = array<i64: 128, 16>}, {pipeline_mode = #tpu.pipeline_mode<synchronous>, transform_indices = @transform_2, window_bounds = array<i64: 1, 128>}, {pipeline_mode = #tpu.pipeline_mode<synchronous>, transform_indices = @transform_3, window_bounds = array<i64: 128, 128>}, {pipeline_mode = #tpu.pipeline_mode<synchronous>, transform_indices = @transform_4, window_bounds = array<i64: 1, 128>}, {pipeline_mode = #tpu.pipeline_mode<synchronous>, transform_indices = @transform_5, window_bounds = array<i64: 128, 128>}, {pipeline_mode = #tpu.pipeline_mode<synchronous>, transform_indices = @transform_6, window_bounds = array<i64: 1, 128>}, {transform_indices = @transform_7, window_bounds = array<i64: 32, 128>}]} {
    %c0 = arith.constant 0 : index
    %c0_0 = arith.constant 0 : index
    %0 = vector.load %arg1[%c0, %c0_0] : memref<32x16xf32, #tpu.memory_space<vmem>>, vector<32x16xf32>
    %1 = arith.truncf %0 : vector<32x16xf32> to vector<32x16xbf16>
    %c0_1 = arith.constant 0 : index
    %c0_2 = arith.constant 0 : index
    %2 = vector.load %arg2[%c0_1, %c0_2] : memref<128x16xbf16, #tpu.memory_space<vmem>>, vector<128x16xbf16>
    %cst = arith.constant dense<0.000000e+00> : vector<32x128xf32>
    %3 = tpu.matmul %1, %2, %cst {dimension_numbers = #tpu.dot_dimension_numbers<[1], [1], [0], [0], [0, 0, 1, 0], [], []>} : vector<32x16xbf16>, vector<128x16xbf16>, vector<32x128xf32> -> vector<32x128xf32>
    %c0_3 = arith.constant 0 : index
    %c0_4 = arith.constant 0 : index
    %4 = vector.load %arg3[%c0_3, %c0_4] : memref<1x128xf32, #tpu.memory_space<vmem>>, vector<1x128xf32>
    %5 = vector.broadcast %4 : vector<1x128xf32> to vector<32x128xf32>
    %6 = arith.addf %3, %5 : vector<32x128xf32>
    %cst_5 = arith.constant 0.000000e+00 : f32
    %7 = vector.broadcast %cst_5 : f32 to vector<32x128xf32>
    %8 = arith.maximumf %6, %7 : vector<32x128xf32>
    %9 = arith.truncf %8 : vector<32x128xf32> to vector<32x128xbf16>
    %c0_6 = arith.constant 0 : index
    %c0_7 = arith.constant 0 : index
    %10 = vector.load %arg4[%c0_6, %c0_7] : memref<128x128xbf16, #tpu.memory_space<vmem>>, vector<128x128xbf16>
    %cst_8 = arith.constant dense<0.000000e+00> : vector<32x128xf32>
    %11 = tpu.matmul %9, %10, %cst_8 {dimension_numbers = #tpu.dot_dimension_numbers<[1], [1], [0], [0], [0, 0, 1, 0], [], []>} : vector<32x128xbf16>, vector<128x128xbf16>, vector<32x128xf32> -> vector<32x128xf32>
    %c0_9 = arith.constant 0 : index
    %c0_10 = arith.constant 0 : index
    %12 = vector.load %arg5[%c0_9, %c0_10] : memref<1x128xf32, #tpu.memory_space<vmem>>, vector<1x128xf32>
    %13 = vector.broadcast %12 : vector<1x128xf32> to vector<32x128xf32>
    %14 = arith.addf %11, %13 : vector<32x128xf32>
    %cst_11 = arith.constant 0.000000e+00 : f32
    %15 = vector.broadcast %cst_11 : f32 to vector<32x128xf32>
    %16 = arith.maximumf %14, %15 : vector<32x128xf32>
    %17 = arith.truncf %16 : vector<32x128xf32> to vector<32x128xbf16>
    %c0_12 = arith.constant 0 : index
    %c0_13 = arith.constant 0 : index
    %18 = vector.load %arg6[%c0_12, %c0_13] : memref<128x128xbf16, #tpu.memory_space<vmem>>, vector<128x128xbf16>
    %cst_14 = arith.constant dense<0.000000e+00> : vector<32x128xf32>
    %19 = tpu.matmul %17, %18, %cst_14 {dimension_numbers = #tpu.dot_dimension_numbers<[1], [1], [0], [0], [0, 0, 1, 0], [], []>} : vector<32x128xbf16>, vector<128x128xbf16>, vector<32x128xf32> -> vector<32x128xf32>
    %c0_15 = arith.constant 0 : index
    %c0_16 = arith.constant 0 : index
    %20 = vector.load %arg7[%c0_15, %c0_16] : memref<1x128xf32, #tpu.memory_space<vmem>>, vector<1x128xf32>
    %21 = vector.broadcast %20 : vector<1x128xf32> to vector<32x128xf32>
    %22 = arith.addf %19, %21 : vector<32x128xf32>
    %cst_17 = arith.constant 0.000000e+00 : f32
    %23 = vector.broadcast %cst_17 : f32 to vector<32x128xf32>
    %24 = arith.subf %23, %22 : vector<32x128xf32>
    %25 = math.exp %24 : vector<32x128xf32>
    %cst_18 = arith.constant 1.000000e+00 : f32
    %26 = vector.broadcast %cst_18 : f32 to vector<32x128xf32>
    %27 = arith.addf %26, %25 : vector<32x128xf32>
    %28 = tpu.reciprocal %27 {approx = true} : vector<32x128xf32> -> vector<32x128xf32>
    %29 = arith.truncf %28 : vector<32x128xf32> to vector<32x128xbf16>
    %c0_19 = arith.constant 0 : index
    %c0_20 = arith.constant 0 : index
    %30 = vector.load %arg8[%c0_19, %c0_20] : memref<32x128xbf16, #tpu.memory_space<vmem>>, vector<32x128xbf16>
    tpu.vector_store %arg8[%c0_19, %c0_20], %29 {strides = array<i32>} : memref<32x128xbf16, #tpu.memory_space<vmem>>, vector<32x128xbf16>,
    return
  }
  func.func @transform_0(%arg0: i32) -> (i32, i32) {
    %c0_i32 = arith.constant 0 : i32
    %c0_i32_0 = arith.constant 0 : i32
    return %arg0, %c0_i32 : i32, i32
  }
  func.func @transform_1(%arg0: i32) -> (i32, i32) {
    %c0_i32 = arith.constant 0 : i32
    %c0_i32_0 = arith.constant 0 : i32
    %c0_i32_1 = arith.constant 0 : i32
    return %c0_i32, %c0_i32_0 : i32, i32
  }
  func.func @transform_2(%arg0: i32) -> (i32, i32) {
    %c0_i32 = arith.constant 0 : i32
    %c0_i32_0 = arith.constant 0 : i32
    %c0_i32_1 = arith.constant 0 : i32
    return %c0_i32, %c0_i32_0 : i32, i32
  }
  func.func @transform_3(%arg0: i32) -> (i32, i32) {
    %c0_i32 = arith.constant 0 : i32
    %c0_i32_0 = arith.constant 0 : i32
    %c0_i32_1 = arith.constant 0 : i32
    return %c0_i32, %c0_i32_0 : i32, i32
  }
  func.func @transform_4(%arg0: i32) -> (i32, i32) {
    %c0_i32 = arith.constant 0 : i32
    %c0_i32_0 = arith.constant 0 : i32
    %c0_i32_1 = arith.constant 0 : i32
    return %c0_i32, %c0_i32_0 : i32, i32
  }
  func.func @transform_5(%arg0: i32) -> (i32, i32) {
    %c0_i32 = arith.constant 0 : i32
    %c0_i32_0 = arith.constant 0 : i32
    %c0_i32_1 = arith.constant 0 : i32
    return %c0_i32, %c0_i32_0 : i32, i32
  }
  func.func @transform_6(%arg0: i32) -> (i32, i32) {
    %c0_i32 = arith.constant 0 : i32
    %c0_i32_0 = arith.constant 0 : i32
    %c0_i32_1 = arith.constant 0 : i32
    return %c0_i32, %c0_i32_0 : i32, i32
  }
  func.func @transform_7(%arg0: i32) -> (i32, i32) {
    %c0_i32 = arith.constant 0 : i32
    %c0_i32_0 = arith.constant 0 : i32
    return %arg0, %c0_i32 : i32, i32
  }
}

</mosaic_0001>

<bundles_post_ra>
// kernel: made_forward.1
= control target key start
LH: loop header
LB: loop body
LE: loop exit
PB: predicated region body
PF: predicated region fallthrough
CT: control target
= control target key end

     0   :  { %s895_s24 = smov 0   ;;  %s1009_s0 = inlined_call_operand.vmem [shape: f32[64,16], index: 0, kind: input, shape index: {}]   ;;  %s1010_s1 = inlined_call_operand.vmem [shape: bf16[128,16], index: 1, kind: input, shape index: {}]   ;;  %s1011_s2 = inlined_call_operand.vmem [shape: f32[1,128], index: 2, kind: input, shape index: {}]   ;;  %s1012_s3 = inlined_call_operand.vmem [shape: bf16[128,128], index: 3, kind: input, shape index: {}]   ;;  %s1013_s4 = inlined_call_operand.vmem [shape: f32[1,128], index: 4, kind: input, shape index: {}]   ;;  %s1014_s5 = inlined_call_operand.vmem [shape: bf16[128,128], index: 5, kind: input, shape index: {}]   ;;  %s1015_s6 = inlined_call_operand.vmem [shape: f32[1,128], index: 6, kind: input, shape index: {}]   ;;  %s1016_s7 = inlined_call_operand.vmem [shape: bf16[64,128], index: 7, kind: output, shape index: {}]  }
   0x1 LB: > { %s668_s25 = sadd.s32 4294967295, %s853_s24   ;;  %p672_p0 = scmp.ge.s32.totalorder %s853_s24, 1  ;;  %s853_s24 = sphi %s895_s24, %s17_s24  }
   0x2   : > { %p238_p1 = scmp.lt.s32.totalorder %s853_s24, 3 }
   0x4   : > { %p239_p2 = pnand %p672_p0, %p238_p1 }
   0x5   : > { %s673_s19 = sshll.u32 (!%p239_p2), %s668_s25, 2 }
   0x6   : > { %242 = sbr.rel (%p239_p2) target bundleno = 537 (0x219), region = 48  ;;  %p271_p3 = scmp.lt.s32.totalorder (!%p239_p2), %s673_s19, 7 }
   0xb   : > { %v784_v0 = vld [vmem:[%s1010_s1 + $0x38] sm:$0xff]  ;;  %vm348_vm0 = vcmask 130048   ;;  %v783_v2 = vld [vmem:[%s1010_s1 + $0x30] sm:$0xff]  ;;  %v782_v4 = vld [vmem:[%s1010_s1 + $0x28] sm:$0xff]  ;;  %s1018_s19 = smov (!%p271_p3, %s673_s19), 7 }
   0xc   : > { %v377_v1 = vsel %vm348_vm0, %v784_v0, 0  ;;  %v374_v3 = vsel %vm348_vm0, %v783_v2, 0  ;;  %v371_v5 = vsel %vm348_vm0, %v782_v4, 0  ;;  %v781_v6 = vld [vmem:[%s1010_s1 + $0x20] sm:$0xff]  ;;  %v780_v8 = vld [vmem:[%s1010_s1 + $0x18] sm:$0xff]  ;;  %v779_v11 = vld [vmem:[%s1010_s1 + $0x10] sm:$0xff] }
   0xd   : > { %379 = vmatpush.bf16.xpose.msra.mxu0 %v377_v1  ;;  %812 = vmatpush.bf16.xpose.msra.mxu3 %v377_v1  ;;  %v368_v7 = vsel %vm348_vm0, %v781_v6, 0  ;;  %v365_v9 = vsel %vm348_vm0, %v780_v8, 0  ;;  %v792_v10 = vld [vmem:[%s1012_s3 + $0x38] sm:$0xff]  ;;  %v362_v12 = vsel %vm348_vm0, %v779_v11, 0  ;;  %v791_v13 = vld [vmem:[%s1012_s3 + $0x30] sm:$0xff]  ;;  %v778_v14 = vld [vmem:[%s1010_s1 + $0x8] sm:$0xff] }
   0xe   : > { %472 = vmatpush.bf16.xpose.msra.mxu1 %v792_v10  ;;  %v359_v15 = vsel %vm348_vm0, %v778_v14, 0  ;;  %v790_v16 = vld [vmem:[%s1012_s3 + $0x28] sm:$0xff]  ;;  %v777_v17 = vld [vmem:[%s1010_s1] sm:$0xff]  ;;  %s674_s27 = sshll.u32 %s1018_s19, 3  ;;  %v788_v26 = vld [vmem:[%s1012_s3 + $0x18] sm:$0xff]  ;;  %s676_s20 = sshll.u32 %s1018_s19, 2 }
   0xf   : > { %s274_s30 = scalar_lea.vmem %s1009_s0, %s674_s27  ;;  %v356_v18 = vsel %vm348_vm0, %v777_v17, 0  ;;  %v789_v19 = vld [vmem:[%s1012_s3 + $0x20] sm:$0xff]  ;;  %v787_v27 = vld [vmem:[%s1012_s3 + $0x10] sm:$0xff]  ;;  %v786_v28 = vld [vmem:[%s1012_s3 + $0x8] sm:$0xff]  ;;  %s280_s23 = scalar_lea.vmem %s1016_s7, %s676_s20 }
  0x10   : > { %v282_v20 = vld [vmem:[%s274_s30] sm:$0xff]  ;;  %v283_v21 = vld [vmem:[%s274_s30 + $0x8] sm:$0xff]  ;;  %v284_v22 = vld [vmem:[%s274_s30 + $0x10] sm:$0xff] }
  0x11   : > { %v285_v23 = vld [vmem:[%s274_s30 + $0x18] sm:$0xff]  ;;  %v286_v24 = vpack.c.bf16 %v283_v21, %v282_v20  ;;  %v785_v29 = vld [vmem:[%s1012_s3] sm:$0xff]  ;;  %v799_v33 = vld [vmem:[%s1014_s5 + $0x30] sm:$0xff] }
  0x12   : > { %v287_v25 = vpack.c.bf16 %v285_v23, %v284_v22  ;;  %v800_v30 = vld [vmem:[%s1014_s5 + $0x38] sm:$0xff]  ;;  %v828_v32 = vld [vmem:[%s1011_s2] ss:$0 sm:$0xff]  ;;  %v798_v41 = vld [vmem:[%s1014_s5 + $0x28] sm:$0xff] }
  0x13   : > { %565 = vmatpush.bf16.xpose.msra.mxu2 %v800_v30  ;;  %v797_v45 = vld [vmem:[%s1014_s5 + $0x20] sm:$0xff]  ;;  %v796_v49 = vld [vmem:[%s1014_s5 + $0x18] sm:$0xff]  ;;  %v795_v50 = vld [vmem:[%s1014_s5 + $0x10] sm:$0xff] }
  0x14   : > { %v794_v51 = vld [vmem:[%s1014_s5 + $0x8] sm:$0xff]  ;;  %v793_v52 = vld [vmem:[%s1014_s5] sm:$0xff] }
  0x15   : > { %380 = vmatpush.bf16.xpose.msra.mxu0 %v374_v3  ;;  %813 = vmatpush.bf16.xpose.msra.mxu3 %v374_v3  ;;  %v829_v54 = vld [vmem:[%s1013_s4] ss:$0 sm:$0xff] }
  0x16   : > { %473 = vmatpush.bf16.xpose.msra.mxu1 %v791_v13  ;;  %v830_v4 = vld [vmem:[%s1015_s6] ss:$0 sm:$0xff] }
  0x1b   : > { %566 = vmatpush.bf16.xpose.msra.mxu2 %v799_v33 }
  0x1d   : > { %381 = vmatpush.bf16.xpose.msra.mxu0 %v371_v5  ;;  %814 = vmatpush.bf16.xpose.msra.mxu3 %v371_v5 }
  0x1e   : > { %474 = vmatpush.bf16.xpose.msra.mxu1 %v790_v16 }
  0x23   : > { %567 = vmatpush.bf16.xpose.msra.mxu2 %v798_v41 }
  0x25   : > { %382 = vmatpush.bf16.xpose.msra.mxu0 %v368_v7  ;;  %815 = vmatpush.bf16.xpose.msra.mxu3 %v368_v7 }
  0x26   : > { %475 = vmatpush.bf16.xpose.msra.mxu1 %v789_v19 }
  0x2b   : > { %568 = vmatpush.bf16.xpose.msra.mxu2 %v797_v45 }
  0x2d   : > { %383 = vmatpush.bf16.xpose.msra.mxu0 %v365_v9  ;;  %816 = vmatpush.bf16.xpose.msra.mxu3 %v365_v9 }
  0x2e   : > { %476 = vmatpush.bf16.xpose.msra.mxu1 %v788_v26 }
  0x33   : > { %569 = vmatpush.bf16.xpose.msra.mxu2 %v796_v49 }
  0x35   : > { %384 = vmatpush.bf16.xpose.msra.mxu0 %v362_v12  ;;  %817 = vmatpush.bf16.xpose.msra.mxu3 %v362_v12 }
  0x36   : > { %477 = vmatpush.bf16.xpose.msra.mxu1 %v787_v27 }
  0x3b   : > { %570 = vmatpush.bf16.xpose.msra.mxu2 %v795_v50 }
  0x3d   : > { %385 = vmatpush.bf16.xpose.msra.mxu0 %v359_v15  ;;  %818 = vmatpush.bf16.xpose.msra.mxu3 %v359_v15 }
  0x3e   : > { %478 = vmatpush.bf16.xpose.msra.mxu1 %v786_v28 }
  0x43   : > { %571 = vmatpush.bf16.xpose.msra.mxu2 %v794_v51 }
  0x45   : > { %386 = vmatpush.bf16.xpose.msra.mxu0 %v356_v18  ;;  %819 = vmatpush.bf16.xpose.msra.mxu3 %v356_v18 }
  0x46   : > { %479 = vmatpush.bf16.xpose.msra.mxu1 %v785_v29 }
  0x4b   : > { %572 = vmatpush.bf16.xpose.msra.mxu2 %v793_v52 }
  0x4c   : > { %709 = vmatmul.msk.bf16.vlgmr.msra.gmra.mxu0 %vm348_vm0, %v286_v24  ;;  %710 = vmatmul.msk.bf16.vlgmr.msra.gmra.mxu3 %vm348_vm0, %v287_v25 }
  0xc9   : > { %v388_v31 = vpop.f32.mrf.mxu0 }
  0xca   : > { %v389_v34 = vadd.f32 %v828_v32, %v388_v31 }
  0xcc   : > { %v398_v38 = vmax.f32 %v389_v34, 0.0 }
  0xcf   : > { %v393_v36 = vpop.f32.mrf.mxu3 }
  0xd0   : > { %v394_v43 = vadd.f32 %v828_v32, %v393_v36 }
  0xd1   : > { %v390_v35 = vpop.f32.mrf.mxu0 }
  0xd2   : > { %v391_v37 = vadd.f32 %v828_v32, %v390_v35  ;;  %v400_v46 = vmax.f32 %v394_v43, 0.0 }
  0xd4   : > { %v399_v39 = vmax.f32 %v391_v37, 0.0 }
  0xd6   : > { %v402_v40 = vpack.c.bf16 %v399_v39, %v398_v38 }
  0xd7   : > { %v395_v42 = vpop.f32.mrf.mxu3 }
  0xd8   : > { %480 = vmatmul.bf16.vlgmr.msra.gmra.mxu1 %v402_v40  ;;  %v396_v44 = vadd.f32 %v828_v32, %v395_v42 }
  0xda   : > { %v401_v47 = vmax.f32 %v396_v44, 0.0 }
  0xdc   : > { %v403_v48 = vpack.c.bf16 %v401_v47, %v400_v46 }
  0xe8   : > { %485 = vmatmul.bf16.gmra.mxu1 %v403_v48 }
 0x155   : > { %v481_v53 = vpop.f32.mrf.mxu1 }
 0x156   : > { %v482_v55 = vadd.f32 %v829_v54, %v481_v53 }
 0x158   : > { %v491_v58 = vmax.f32 %v482_v55, 0.0 }
 0x15d   : > { %v483_v56 = vpop.f32.mrf.mxu1 }
 0x15e   : > { %v484_v57 = vadd.f32 %v829_v54, %v483_v56 }
 0x160   : > { %v492_v59 = vmax.f32 %v484_v57, 0.0 }
 0x162   : > { %v495_v60 = vpack.c.bf16 %v492_v59, %v491_v58 }
 0x164   : > { %573 = vmatmul.bf16.vlgmr.msra.gmra.mxu2 %v495_v60 }
 0x165   : > { %v486_v61 = vpop.f32.mrf.mxu1 }
 0x166   : > { %v487_v62 = vadd.f32 %v829_v54, %v486_v61 }
 0x168   : > { %v493_v1 = vmax.f32 %v487_v62, 0.0 }
 0x16d   : > { %v488_v63 = vpop.f32.mrf.mxu1 }
 0x16e   : > { %v489_v0 = vadd.f32 %v829_v54, %v488_v63 }
 0x170   : > { %v494_v2 = vmax.f32 %v489_v0, 0.0 }
 0x172   : > { %v496_v3 = vpack.c.bf16 %v494_v2, %v493_v1 }
 0x174   : > { %578 = vmatmul.bf16.gmra.mxu2 %v496_v3 }
 0x1e7   : > { %v574_v5 = vpop.f32.mrf.mxu2 }
 0x1e8   : > { %v575_v6 = vadd.f32 %v830_v4, %v574_v5 }
 0x1ea   : > { %v584_v7 = vsub.f32 0.0, %v575_v6 }
 0x1ec   : > { %v588_v8 = vmul.f32 1.442695, %v584_v7 }
 0x1ee   : > { %831 = vpow2.f32 %v588_v8 }
 0x1ef   : > { %v576_v9 = vpop.f32.mrf.mxu2 }
 0x1f0   : > { %v577_v10 = vadd.f32 %v830_v4, %v576_v9 }
 0x1f2   : > { %v585_v11 = vsub.f32 0.0, %v577_v10 }
 0x1f4   : > { %v590_v12 = vmul.f32 1.442695, %v585_v11  ;;  %v832_v13 = vpop.eup %831 }
 0x1f5   : > { %v596_v16 = vadd.f32 1.0, %v832_v13 }
 0x1f6   : > { %833 = vpow2.f32 %v590_v12 }
 0x1f7   : > { %v579_v14 = vpop.f32.mrf.mxu2  ;;  %835 = vrcp.f32 %v596_v16 }
 0x1f8   : > { %v580_v15 = vadd.f32 %v830_v4, %v579_v14 }
 0x1fa   : > { %v586_v17 = vsub.f32 0.0, %v580_v15 }
 0x1fc   : > { %v834_v18 = vpop.eup %833  ;;  %v592_v20 = vmul.f32 1.442695, %v586_v17 }
 0x1fd   : > { %v597_v19 = vadd.f32 1.0, %v834_v18  ;;  %v836_v24 = vpop.eup %835 }
 0x1ff   : > { %837 = vrcp.f32 %v597_v19  ;;  %v581_v21 = vpop.f32.mrf.mxu2 }
 0x200   : > { %v582_v22 = vadd.f32 %v830_v4, %v581_v21  ;;  %839 = vpow2.f32 %v592_v20 }
 0x202   : > { %v587_v23 = vsub.f32 0.0, %v582_v22 }
 0x204   : > { %v594_v25 = vmul.f32 1.442695, %v587_v23 }
 0x205   : > { %v838_v26 = vpop.eup %837 }
 0x206   : > { %v804_v27 = vpack.c.bf16 %v838_v26, %v836_v24  ;;  %841 = vpow2.f32 %v594_v25  ;;  %v840_v28 = vpop.eup %839 }
 0x207   : > { %v598_v29 = vadd.f32 1.0, %v840_v28 }
 0x208   : > { %805 = vst [vmem:[%s280_s23] sm:$0xff] %v804_v27  }
 0x209   : > { %843 = vrcp.f32 %v598_v29 }
 0x20c   : > { %v842_v30 = vpop.eup %841 }
 0x20d   : > { %v599_v31 = vadd.f32 1.0, %v842_v30 }
 0x20f   : > { %845 = vrcp.f32 %v599_v31  ;;  %v844_v32 = vpop.eup %843 }
 0x215   : > { %v846_v33 = vpop.eup %845 }
 0x216   : > { %v809_v34 = vpack.c.bf16 %v846_v33, %v844_v32 }
 0x218   : > { %811 = vst [vmem:[%s280_s23 + $0x8] sm:$0xff] %v809_v34  }
 0x219 PF: > { %s17_s24 = sadd.s32 1, %s853_s24  }
 0x21a   : > { %p14_p4 = scmp.ge.s32.totalorder %s17_s24, 4  }
 0x21c   :  { %16 = sbr.rel (!%p14_p4) target bundleno = 1 (0x1), region = 78 }

</bundles_post_ra>
